<compile_context>
chip_gen: v5e
topology: v5e:2x2
jax: 0.10.0
libtpu: 0.0.40
codegen_flags: <defaults>
</compile_context>

<pallas_src>
import functools
import math

import jax
import jax.numpy as jnp
from jax import lax
from jax.experimental import pallas as pl
from jax.experimental.pallas import tpu as pltpu

# args.* constants from the reference script (chosen deterministically here).
K = 2          # args.k
ALPHA = 0.6    # args.alpha
BETA = 0.4     # args.beta

LANES = 128    # lane width for padded feature / hidden / class axes


def gann_kernel(adj_ref, x_ref, w1_ref, b1_ref, w2_ref, b2_ref, out_ref, *, nclass):
    f32 = jnp.float32
    bf16 = jnp.bfloat16

    adj = adj_ref[...]          # [N, N] bf16 -- pure MXU operand, cast in wrapper
    x0 = x_ref[...]             # [N, Fp] f32 (lane-padded)
    w1 = w1_ref[...]            # [Fp, Hp] bf16
    w2 = w2_ref[...]            # [Hp, Cp] bf16

    # ---- HITS-style propagation (K static iterations) ----
    authority = x0
    hub = x0
    inter = x0
    for _ in range(K):
        authority = jnp.clip(
            jnp.dot(adj, inter.astype(bf16), preferred_element_type=f32),
            0.0, 1.0)
        inter = jnp.clip(ALPHA * authority + BETA * hub, 0.0, 1.0)
        # hub = clip(adj.T @ inter): contract adj dim-0 with inter dim-0 directly
        # on the MXU -- no transpose is materialized.
        hub = jnp.clip(
            lax.dot_general(adj, inter.astype(bf16),
                            dimension_numbers=(((0,), (0,)), ((), ())),
                            preferred_element_type=f32),
            0.0, 1.0)
    # Blend immediately; authority / inter are dead past this point.
    x = ALPHA * authority + BETA * hub

    # ---- layer1: ReLU(adj @ (x @ W1) + b1) ----
    support1 = jnp.dot(x.astype(bf16), w1, preferred_element_type=f32)
    h = jnp.dot(adj, support1.astype(bf16), preferred_element_type=f32) + b1_ref[...]
    h = jnp.maximum(h, 0.0)

    # dropout (p=0.5) is identity in eval mode
    # TODO(synk): training-mode dropout (F.dropout with p=0.5) not applied.

    # ---- layer2: adj @ (h @ W2) + b2 ----
    support2 = jnp.dot(h.astype(bf16), w2, preferred_element_type=f32)
    logits = jnp.dot(adj, support2.astype(bf16), preferred_element_type=f32) + b2_ref[...]

    # ---- masked log_softmax over the lane-padded class axis ----
    col = lax.broadcasted_iota(jnp.int32, logits.shape, dimension=1)
    valid = col < nclass
    masked = jnp.where(valid, logits, -jnp.inf)
    m = jnp.max(masked, axis=1, keepdims=True)
    z = logits - m
    ez = jnp.where(valid, jnp.exp(z), 0.0)
    lse = jnp.log(jnp.sum(ez, axis=1, keepdims=True))
    out_ref[...] = jnp.where(valid, z - lse, 0.0)


def _round_up(v, m):
    return ((v + m - 1) // m) * m


def _pad2(a, rows, cols, dtype):
    out = jnp.zeros((rows, cols), dtype)
    return out.at[: a.shape[0], : a.shape[1]].set(a.astype(dtype))


def gann_forward(x, adj, w1, b1, w2, b2):
    n, nfeat = x.shape
    nhid = w1.shape[1]
    nclass = w2.shape[1]

    n_p = _round_up(n, 8)
    f_p = _round_up(nfeat, LANES)
    h_p = _round_up(nhid, LANES)
    c_p = _round_up(nclass, LANES)

    # Zero-padding is numerically transparent for every op in the kernel.
    adj_p = _pad2(adj, n_p, n_p, jnp.bfloat16)      # MXU-only operand -> bf16
    x_p = _pad2(x, n_p, f_p, jnp.float32)
    w1_p = _pad2(w1, f_p, h_p, jnp.bfloat16)
    b1_p = _pad2(b1, 1, h_p, jnp.float32)
    w2_p = _pad2(w2, h_p, c_p, jnp.bfloat16)
    b2_p = _pad2(b2, 1, c_p, jnp.float32)

    flops = (K * 2 * (2 * n_p * n_p * f_p)
             + 2 * n_p * f_p * h_p + 2 * n_p * n_p * h_p
             + 2 * n_p * h_p * c_p + 2 * n_p * n_p * c_p)
    transcendentals = n_p * c_p + n_p   # exp per padded class + log per row
    bytes_accessed = sum(int(a.size) * a.dtype.itemsize
                         for a in (adj_p, x_p, w1_p, b1_p, w2_p, b2_p))
    bytes_accessed += n_p * c_p * 4

    full = lambda shape: pl.BlockSpec(shape, lambda: (0, 0))
    kernel = functools.partial(gann_kernel, nclass=nclass)

    out_padded = pl.pallas_call(
        kernel,
        out_shape=jax.ShapeDtypeStruct((n_p, c_p), jnp.float32),
        grid=(),
        in_specs=[
            full(adj_p.shape),
            full(x_p.shape),
            full(w1_p.shape),
            full(b1_p.shape),
            full(w2_p.shape),
            full(b2_p.shape),
        ],
        out_specs=full((n_p, c_p)),
        cost_estimate=pl.CostEstimate(flops=flops,
                                      transcendentals=transcendentals,
                                      bytes_accessed=bytes_accessed),
        compiler_params=pltpu.CompilerParams(vmem_limit_bytes=32 * 1024 * 1024),
    )(adj_p, x_p, w1_p, b1_p, w2_p, b2_p)

    return out_padded[:n, :nclass]


def init_encoder_params(key, in_features, out_features):
    # Matches Encoder.reset_parameters: uniform(-stdv, stdv), stdv = 1/sqrt(out_features)
    stdv = 1.0 / math.sqrt(out_features)
    kw, kb = jax.random.split(key)
    w = jax.random.uniform(kw, (in_features, out_features), jnp.float32,
                           minval=-stdv, maxval=stdv)
    b = jax.random.uniform(kb, (1, out_features), jnp.float32,
                           minval=-stdv, maxval=stdv)
    return w, b


def reference_forward(x, adj, w1, b1, w2, b2):
    # Pure-JAX f32 reference mirroring the PyTorch module (eval mode).
    authority = hub = inter = x
    for _ in range(K):
        authority = jnp.clip(adj @ inter, 0.0, 1.0)
        inter = jnp.clip(ALPHA * authority + BETA * hub, 0.0, 1.0)
        hub = jnp.clip(adj.T @ inter, 0.0, 1.0)
    xx = ALPHA * authority + BETA * hub
    h = jnp.maximum(adj @ (xx @ w1) + b1, 0.0)
    logits = adj @ (h @ w2) + b2
    return jax.nn.log_softmax(logits, axis=1)


if __name__ == "__main__":
    N, NFEAT, NHID, NCLASS = 8, 16, 32, 4

    key = jax.random.PRNGKey(0)
    k_x, k_adj, k_l1, k_l2 = jax.random.split(key, 4)

    x = jax.random.uniform(k_x, (N, NFEAT), jnp.float32)
    # symmetric-ish dense adjacency with self loops, row-normalized
    a = (jax.random.uniform(k_adj, (N, N)) > 0.6).astype(jnp.float32)
    adj = a + a.T + jnp.eye(N, dtype=jnp.float32)
    adj = adj / jnp.sum(adj, axis=1, keepdims=True)

    w1, b1 = init_encoder_params(k_l1, NFEAT, NHID)
    w2, b2 = init_encoder_params(k_l2, NHID, NCLASS)

    out = gann_forward(x, adj, w1, b1, w2, b2)
    out = jax.block_until_ready(out)

    ref = reference_forward(x, adj, w1, b1, w2, b2)
    assert out.shape == (N, NCLASS)
    assert jnp.all(jnp.isfinite(out)), "non-finite output"
    # bf16 MXU operands vs f32 reference -> relaxed tolerance.
    assert jnp.allclose(out, ref, atol=5e-2, rtol=5e-2), "mismatch vs reference"

    print("KERNEL_OK")
</pallas_src>

<mosaic_0001>
module attributes {stable_mosaic.version = 11 : i64} {
  func.func @gann_kernel(%arg0: memref<8x8xbf16, #tpu.memory_space<vmem>>, %arg1: memref<8x128xf32, #tpu.memory_space<vmem>>, %arg2: memref<128x128xbf16, #tpu.memory_space<vmem>>, %arg3: memref<1x128xf32, #tpu.memory_space<vmem>>, %arg4: memref<128x128xbf16, #tpu.memory_space<vmem>>, %arg5: memref<1x128xf32, #tpu.memory_space<vmem>>, %arg6: memref<8x128xf32, #tpu.memory_space<vmem>>) attributes {dimension_semantics = [], scalar_prefetch = 0 : i64, scratch_operands = 0 : i64, tpu.core_type = #tpu.core_type<tc>} {
    %c0 = arith.constant 0 : index
    %c0_0 = arith.constant 0 : index
    %0 = vector.load %arg0[%c0, %c0_0] : memref<8x8xbf16, #tpu.memory_space<vmem>>, vector<8x8xbf16>
    %c0_1 = arith.constant 0 : index
    %c0_2 = arith.constant 0 : index
    %1 = vector.load %arg1[%c0_1, %c0_2] : memref<8x128xf32, #tpu.memory_space<vmem>>, vector<8x128xf32>
    %c0_3 = arith.constant 0 : index
    %c0_4 = arith.constant 0 : index
    %2 = vector.load %arg2[%c0_3, %c0_4] : memref<128x128xbf16, #tpu.memory_space<vmem>>, vector<128x128xbf16>
    %c0_5 = arith.constant 0 : index
    %c0_6 = arith.constant 0 : index
    %3 = vector.load %arg4[%c0_5, %c0_6] : memref<128x128xbf16, #tpu.memory_space<vmem>>, vector<128x128xbf16>
    %4 = arith.truncf %1 : vector<8x128xf32> to vector<8x128xbf16>
    %cst = arith.constant dense<0.000000e+00> : vector<8x128xf32>
    %5 = tpu.matmul %0, %4, %cst {dimension_numbers = #tpu.dot_dimension_numbers<[1], [0], [0], [1], [0, 0, 1, 1], [], []>} : vector<8x8xbf16>, vector<8x128xbf16>, vector<8x128xf32> -> vector<8x128xf32>
    %cst_7 = arith.constant 0.000000e+00 : f32
    %cst_8 = arith.constant 1.000000e+00 : f32
    %6 = vector.broadcast %cst_7 : f32 to vector<8x128xf32>
    %7 = arith.maximumf %6, %5 : vector<8x128xf32>
    %8 = vector.broadcast %cst_8 : f32 to vector<8x128xf32>
    %9 = arith.minimumf %8, %7 : vector<8x128xf32>
    %cst_9 = arith.constant 6.000000e-01 : f32
    %10 = vector.broadcast %cst_9 : f32 to vector<8x128xf32>
    %11 = arith.mulf %10, %9 : vector<8x128xf32>
    %cst_10 = arith.constant 4.000000e-01 : f32
    %12 = vector.broadcast %cst_10 : f32 to vector<8x128xf32>
    %13 = arith.mulf %12, %1 : vector<8x128xf32>
    %14 = arith.addf %11, %13 : vector<8x128xf32>
    %cst_11 = arith.constant 0.000000e+00 : f32
    %cst_12 = arith.constant 1.000000e+00 : f32
    %15 = vector.broadcast %cst_11 : f32 to vector<8x128xf32>
    %16 = arith.maximumf %15, %14 : vector<8x128xf32>
    %17 = vector.broadcast %cst_12 : f32 to vector<8x128xf32>
    %18 = arith.minimumf %17, %16 : vector<8x128xf32>
    %19 = arith.truncf %18 : vector<8x128xf32> to vector<8x128xbf16>
    %cst_13 = arith.constant dense<0.000000e+00> : vector<8x128xf32>
    %20 = tpu.matmul %0, %19, %cst_13 {dimension_numbers = #tpu.dot_dimension_numbers<[0], [0], [1], [1], [0, 1, 1, 1], [], []>} : vector<8x8xbf16>, vector<8x128xbf16>, vector<8x128xf32> -> vector<8x128xf32>
    %cst_14 = arith.constant 0.000000e+00 : f32
    %cst_15 = arith.constant 1.000000e+00 : f32
    %21 = vector.broadcast %cst_14 : f32 to vector<8x128xf32>
    %22 = arith.maximumf %21, %20 : vector<8x128xf32>
    %23 = vector.broadcast %cst_15 : f32 to vector<8x128xf32>
    %24 = arith.minimumf %23, %22 : vector<8x128xf32>
    %25 = arith.truncf %18 : vector<8x128xf32> to vector<8x128xbf16>
    %cst_16 = arith.constant dense<0.000000e+00> : vector<8x128xf32>
    %26 = tpu.matmul %0, %25, %cst_16 {dimension_numbers = #tpu.dot_dimension_numbers<[1], [0], [0], [1], [0, 0, 1, 1], [], []>} : vector<8x8xbf16>, vector<8x128xbf16>, vector<8x128xf32> -> vector<8x128xf32>
    %cst_17 = arith.constant 0.000000e+00 : f32
    %cst_18 = arith.constant 1.000000e+00 : f32
    %27 = vector.broadcast %cst_17 : f32 to vector<8x128xf32>
    %28 = arith.maximumf %27, %26 : vector<8x128xf32>
    %29 = vector.broadcast %cst_18 : f32 to vector<8x128xf32>
    %30 = arith.minimumf %29, %28 : vector<8x128xf32>
    %cst_19 = arith.constant 6.000000e-01 : f32
    %31 = vector.broadcast %cst_19 : f32 to vector<8x128xf32>
    %32 = arith.mulf %31, %30 : vector<8x128xf32>
    %cst_20 = arith.constant 4.000000e-01 : f32
    %33 = vector.broadcast %cst_20 : f32 to vector<8x128xf32>
    %34 = arith.mulf %33, %24 : vector<8x128xf32>
    %35 = arith.addf %32, %34 : vector<8x128xf32>
    %cst_21 = arith.constant 0.000000e+00 : f32
    %cst_22 = arith.constant 1.000000e+00 : f32
    %36 = vector.broadcast %cst_21 : f32 to vector<8x128xf32>
    %37 = arith.maximumf %36, %35 : vector<8x128xf32>
    %38 = vector.broadcast %cst_22 : f32 to vector<8x128xf32>
    %39 = arith.minimumf %38, %37 : vector<8x128xf32>
    %40 = arith.truncf %39 : vector<8x128xf32> to vector<8x128xbf16>
    %cst_23 = arith.constant dense<0.000000e+00> : vector<8x128xf32>
    %41 = tpu.matmul %0, %40, %cst_23 {dimension_numbers = #tpu.dot_dimension_numbers<[0], [0], [1], [1], [0, 1, 1, 1], [], []>} : vector<8x8xbf16>, vector<8x128xbf16>, vector<8x128xf32> -> vector<8x128xf32>
    %cst_24 = arith.constant 0.000000e+00 : f32
    %cst_25 = arith.constant 1.000000e+00 : f32
    %42 = vector.broadcast %cst_24 : f32 to vector<8x128xf32>
    %43 = arith.maximumf %42, %41 : vector<8x128xf32>
    %44 = vector.broadcast %cst_25 : f32 to vector<8x128xf32>
    %45 = arith.minimumf %44, %43 : vector<8x128xf32>
    %cst_26 = arith.constant 6.000000e-01 : f32
    %46 = vector.broadcast %cst_26 : f32 to vector<8x128xf32>
    %47 = arith.mulf %46, %30 : vector<8x128xf32>
    %cst_27 = arith.constant 4.000000e-01 : f32
    %48 = vector.broadcast %cst_27 : f32 to vector<8x128xf32>
    %49 = arith.mulf %48, %45 : vector<8x128xf32>
    %50 = arith.addf %47, %49 : vector<8x128xf32>
    %51 = arith.truncf %50 : vector<8x128xf32> to vector<8x128xbf16>
    %cst_28 = arith.constant dense<0.000000e+00> : vector<8x128xf32>
    %52 = tpu.matmul %51, %2, %cst_28 {dimension_numbers = #tpu.dot_dimension_numbers<[1], [0], [0], [1], [0, 0, 1, 1], [], []>} : vector<8x128xbf16>, vector<128x128xbf16>, vector<8x128xf32> -> vector<8x128xf32>
    %53 = arith.truncf %52 : vector<8x128xf32> to vector<8x128xbf16>
    %cst_29 = arith.constant dense<0.000000e+00> : vector<8x128xf32>
    %54 = tpu.matmul %0, %53, %cst_29 {dimension_numbers = #tpu.dot_dimension_numbers<[1], [0], [0], [1], [0, 0, 1, 1], [], []>} : vector<8x8xbf16>, vector<8x128xbf16>, vector<8x128xf32> -> vector<8x128xf32>
    %c0_30 = arith.constant 0 : index
    %c0_31 = arith.constant 0 : index
    %55 = vector.load %arg3[%c0_30, %c0_31] : memref<1x128xf32, #tpu.memory_space<vmem>>, vector<1x128xf32>
    %56 = vector.broadcast %55 : vector<1x128xf32> to vector<8x128xf32>
    %57 = arith.addf %54, %56 : vector<8x128xf32>
    %cst_32 = arith.constant 0.000000e+00 : f32
    %58 = vector.broadcast %cst_32 : f32 to vector<8x128xf32>
    %59 = arith.maximumf %57, %58 : vector<8x128xf32>
    %60 = arith.truncf %59 : vector<8x128xf32> to vector<8x128xbf16>
    %cst_33 = arith.constant dense<0.000000e+00> : vector<8x128xf32>
    %61 = tpu.matmul %60, %3, %cst_33 {dimension_numbers = #tpu.dot_dimension_numbers<[1], [0], [0], [1], [0, 0, 1, 1], [], []>} : vector<8x128xbf16>, vector<128x128xbf16>, vector<8x128xf32> -> vector<8x128xf32>
    %62 = arith.truncf %61 : vector<8x128xf32> to vector<8x128xbf16>
    %cst_34 = arith.constant dense<0.000000e+00> : vector<8x128xf32>
    %63 = tpu.matmul %0, %62, %cst_34 {dimension_numbers = #tpu.dot_dimension_numbers<[1], [0], [0], [1], [0, 0, 1, 1], [], []>} : vector<8x8xbf16>, vector<8x128xbf16>, vector<8x128xf32> -> vector<8x128xf32>
    %c0_35 = arith.constant 0 : index
    %c0_36 = arith.constant 0 : index
    %64 = vector.load %arg5[%c0_35, %c0_36] : memref<1x128xf32, #tpu.memory_space<vmem>>, vector<1x128xf32>
    %65 = vector.broadcast %64 : vector<1x128xf32> to vector<8x128xf32>
    %66 = arith.addf %63, %65 : vector<8x128xf32>
    %67 = tpu.iota {dimensions = array<i32: 1>} : vector<8x128xi32>
    %c4_i32 = arith.constant 4 : i32
    %68 = vector.broadcast %c4_i32 : i32 to vector<8x128xi32>
    %69 = arith.cmpi slt, %67, %68 : vector<8x128xi32>
    %cst_37 = arith.constant 0xFF800000 : f32
    %70 = vector.broadcast %cst_37 : f32 to vector<8x128xf32>
    %71 = arith.select %69, %66, %70 : vector<8x128xi1>, vector<8x128xf32>
    %cst_38 = arith.constant dense<0xFF800000> : vector<8xf32>
    %72 = vector.multi_reduction <maximumf>, %71, %cst_38 [1] : vector<8x128xf32> to vector<8xf32>
    %73 = vector.shape_cast %72 : vector<8xf32> to vector<8x1xf32>
    %74 = vector.broadcast %73 : vector<8x1xf32> to vector<8x128xf32>
    %75 = arith.subf %66, %74 : vector<8x128xf32>
    %76 = math.exp %75 : vector<8x128xf32>
    %cst_39 = arith.constant 0.000000e+00 : f32
    %77 = vector.broadcast %cst_39 : f32 to vector<8x128xf32>
    %78 = arith.select %69, %76, %77 : vector<8x128xi1>, vector<8x128xf32>
    %cst_40 = arith.constant dense<0.000000e+00> : vector<8xf32>
    %79 = vector.multi_reduction <add>, %78, %cst_40 [1] : vector<8x128xf32> to vector<8xf32>
    %80 = vector.shape_cast %79 : vector<8xf32> to vector<8x1xf32>
    %81 = math.log %80 : vector<8x1xf32>
    %82 = vector.broadcast %81 : vector<8x1xf32> to vector<8x128xf32>
    %83 = arith.subf %75, %82 : vector<8x128xf32>
    %cst_41 = arith.constant 0.000000e+00 : f32
    %84 = vector.broadcast %cst_41 : f32 to vector<8x128xf32>
    %85 = arith.select %69, %83, %84 : vector<8x128xi1>, vector<8x128xf32>
    %c0_42 = arith.constant 0 : index
    %c0_43 = arith.constant 0 : index
    %86 = vector.load %arg6[%c0_42, %c0_43] : memref<8x128xf32, #tpu.memory_space<vmem>>, vector<8x128xf32>
    tpu.vector_store %arg6[%c0_42, %c0_43], %85 {strides = array<i32>} : memref<8x128xf32, #tpu.memory_space<vmem>>, vector<8x128xf32>,
    return
  }
}

</mosaic_0001>

<bundles_post_ra>
// kernel: tpu_custom_call.1
= control target key start
LH: loop header
LB: loop body
LE: loop exit
PB: predicated region body
PF: predicated region fallthrough
CT: control target
= control target key end

     0   :  { %11 = vsyncpa [#allocation3], 0  ;;  %s741_s0 = inlined_call_operand.hbm [shape: bf16[8,8], index: 0, kind: input, shape index: {}]   ;;  %s742_s1 = inlined_call_operand.hbm [shape: f32[8,128], index: 1, kind: input, shape index: {}]   ;;  %s743_s2 = inlined_call_operand.hbm [shape: bf16[128,128], index: 2, kind: input, shape index: {}]   ;;  %s744_s3 = inlined_call_operand.vmem [shape: f32[1,128], index: 3, kind: input, shape index: {}]   ;;  %s745_s4 = inlined_call_operand.hbm [shape: bf16[128,128], index: 4, kind: input, shape index: {}]   ;;  %s746_s5 = inlined_call_operand.vmem [shape: f32[1,128], index: 5, kind: input, shape index: {}]   ;;  %s747_s6 = inlined_call_operand.hbm [shape: f32[8,128], index: 6, kind: output, shape index: {}]  }
   0x1   :  { %12 = vsyncpa [#allocation6], 0 }
   0x2   :  { %13 = vsyncpa [#allocation9], 0  ;;  %s31_s23 = sshll.u32 %s742_s1, 4  ;;  %s32_s23 = int_to_ptr.hbm [resolvable:$true] %s31_s23 }
   0x3   :  { %14 = vsyncpa [#allocation4], 0  ;;  %s657_s24 = smov [#allocation5]   ;;  %s20_s28 = sshll.u32 %s741_s0, 4  ;;  %s21_s28 = int_to_ptr.hbm [resolvable:$true] %s20_s28 }
   0x4   :  { %s33_s25 = sshll.u32 %s657_s24, 4  ;;  %s658_s29 = smov [#allocation2]   ;;  %s34_s25 = int_to_ptr.vmem [resolvable:$true] %s33_s25 }
   0x5   :  { %36 = dma.hbm_to_vmem [thread:$0]  %s32_s23, 128, %s34_s25, [#allocation6]  }
   0x6   :  { %s22_s30 = sshll.u32 %s658_s29, 4  ;;  %s41_s9 = sshll.u32 %s743_s2, 4  ;;  %s23_s30 = int_to_ptr.vmem [resolvable:$true] %s22_s30  ;;  %s42_s9 = int_to_ptr.hbm [resolvable:$true] %s41_s9 }
   0x7   :  { %25 = dma.hbm_to_vmem [thread:$0]  %s21_s28, 64, %s23_s30, [#allocation3]  }
   0x8   :  { %s659_s1 = smov [#allocation7]   ;;  %s56_s13 = sshll.u32 %s745_s4, 4  ;;  %s57_s13 = int_to_ptr.hbm [resolvable:$true] %s56_s13 }
   0x9   :  { %s43_s10 = sshll.u32 %s659_s1, 4  ;;  %s660_s14 = smov 64   ;;  %s44_s10 = int_to_ptr.vmem [resolvable:$true] %s43_s10 }
   0xa   :  { %s661_s0 = smov 4   ;;  %s662_s15 = smov [#allocation8]  }
   0xb   :  { %49 = dma.hbm_to_vmem [thread:$0]  %s42_s9, 1024, %s44_s10, [#allocation6], %s660_s14, %s660_s14, %s661_s0  }
   0xc   :  { %s58_s16 = sshll.u32 %s662_s15, 4  ;;  %s59_s16 = int_to_ptr.vmem [resolvable:$true] %s58_s16 }
   0xd   :  { %64 = dma.hbm_to_vmem [thread:$0]  %s57_s13, 1024, %s59_s16, [#allocation9], %s660_s14, %s660_s14, %s661_s0  }
   0xe   :  { %649 = dma.done.wait [#allocation3], 64  }
   0xf   :  { %650 = vsyncadd [#allocation3], 4294967232 }
  0x10   :  { %651 = dma.done.wait [#allocation6], 1152  }
  0x11   :  { %652 = vsyncadd [#allocation6], 4294966144 }
  0x12   :  { %653 = dma.done.wait [#allocation9], 1024  }
  0x13   :  { %654 = vsyncadd [#allocation9], 4294966272  ;;  %v711_v0 = vld [vmem:[#allocation2] sm:$0xf]  ;;  %v85_v1 = vld [vmem:[#allocation5] sm:$0xff]  ;;  %vm123_vm0 = vcmask 1043456  }
  0x14   :  { %148 = vxpose.xlu0.c.b16.start.end [1/1] (short) (narrow) %v711_v0, 16  ;;  %v118_v2 = vpack.c.bf16 %v85_v1, %v85_v1  ;;  %vm119_vm1 = vcmask 64512   ;;  %v143_v6 = vmul.f32 0.4, %v85_v1  ;;  %v506_v17 = vld [vmem:[#allocation7 + $0x38] sm:$0xff]  ;;  %v505_v18 = vld [vmem:[#allocation7 + $0x30] sm:$0xff] }
  0x15   :  { %v504_v20 = vld [vmem:[#allocation7 + $0x28] sm:$0xff]  ;;  %v503_v22 = vld [vmem:[#allocation7 + $0x20] sm:$0xff]  ;;  %v502_v26 = vld [vmem:[#allocation7 + $0x18] sm:$0xff]  ;;  %s417_s21 = sshll.u32 %s747_s6, 4  ;;  %s418_s21 = int_to_ptr.hbm [resolvable:$true] %s417_s21 }
  0x16   :  { %v125_v3 = vsel %vm123_vm0, %v118_v2, 0  ;;  %v501_v36 = vld [vmem:[#allocation7 + $0x10] sm:$0xff]  ;;  %v500_v37 = vld [vmem:[#allocation7 + $0x8] sm:$0xff]  ;;  %v499_v38 = vld [vmem:[#allocation7] sm:$0xff] }
  0x17   :  { %134 = vmatpush.bf16.msra.mxu0 %v125_v3  ;;  %v514_v46 = vld [vmem:[#allocation8 + $0x38] sm:$0xff]  ;;  %v513_v47 = vld [vmem:[#allocation8 + $0x30] sm:$0xff]  ;;  %v512_v48 = vld [vmem:[#allocation8 + $0x28] sm:$0xff] }
  0x18   :  { %v511_v49 = vld [vmem:[#allocation8 + $0x20] sm:$0xff]  ;;  %v510_v50 = vld [vmem:[#allocation8 + $0x18] sm:$0xff]  ;;  %v509_v51 = vld [vmem:[#allocation8 + $0x10] sm:$0xff] }
  0x19   :  { %v508_v56 = vld [vmem:[#allocation8 + $0x8] sm:$0xff]  ;;  %v507_v57 = vld [vmem:[#allocation8] sm:$0xff]  ;;  %v523_v58 = vld [vmem:[%s744_s3] ss:$0 sm:$0xff]  ;;  %s663_s3 = smov [#allocation10]  }
  0x1a   :  { %429 = vmatmul.msk.bf16.vlgmr.msra.gmra.mxu0 %vm119_vm1, %v711_v0 }
  0x1b   :  { %275 = vmatpush.bf16.msrb.mxu0 %v506_v17 }
  0x1f   :  { %276 = vmatpush.bf16.msrb.mxu0 %v505_v18 }
  0x23   :  { %277 = vmatpush.bf16.msrb.mxu0 %v504_v20 }
  0x27   :  { %278 = vmatpush.bf16.msrb.mxu0 %v503_v22 }
  0x2b   :  { %279 = vmatpush.bf16.msrb.mxu0 %v502_v26 }
  0x2f   :  { %280 = vmatpush.bf16.msrb.mxu0 %v501_v36 }
  0x33   :  { %281 = vmatpush.bf16.msrb.mxu0 %v500_v37 }
  0x37   :  { %282 = vmatpush.bf16.msrb.mxu0 %v499_v38 }
  0x97   :  { %v136_v4 = vpop.f32.mrf.mxu0 }
  0x98   :  { %v140_v5 = vmax.f32 %v136_v4, 0.0 }
  0x9a   :  { %v141_v7 = vmin.f32 %v140_v5, 1.0  ;;  %v393_v5 = vlaneseq }
  0x9c   :  { %v142_v8 = vmul.f32 0.6, %v141_v7  ;;  %v524_v7 = vld [vmem:[%s746_s5] ss:$0 sm:$0xff]  ;;  %s415_s5 = sshll.u32 %s663_s3, 4  ;;  %s416_s5 = int_to_ptr.vmem [resolvable:$true] %s415_s5 }
  0x9e   :  { %v144_v9 = vadd.f32 %v143_v6, %v142_v8  ;;  %v394_v6 = vand.u32 127, %v393_v5 }
  0x9f   :  { %v138_v10 = vpop.f32.mrf.mxu0 }
  0xa0   :  { %v145_v11 = vmax.f32 %v144_v9, 0.0  ;;  %vm395_vm2 = vcmp.lt.s32.totalorder %v394_v6, 4 }
  0xa2   :  { %v146_v12 = vmin.f32 %v145_v11, 1.0 }
  0xa4   :  { %v147_v13 = vpack.c.bf16 %v146_v12, %v146_v12 }
  0xa6   :  { %v168_v14 = vsel %vm123_vm0, %v147_v13, 0 }
  0xa7   :  { %192 = vmatpush.bf16.msra.mxu2 %v168_v14  ;;  %177 = vmatpush.bf16.msra.mxu1 %v168_v14 }
  0xaa   :  { %431 = vmatmul.msk.bf16.vlgmr.msra.gmra.mxu2 %vm119_vm1, %v711_v0 }
  0xab   :  { %359 = vmatpush.bf16.msrb.mxu2 %v514_v46 }
  0xaf   :  { %360 = vmatpush.bf16.msrb.mxu2 %v513_v47 }
  0xb3   :  { %361 = vmatpush.bf16.msrb.mxu2 %v512_v48 }
  0xb7   :  { %362 = vmatpush.bf16.msrb.mxu2 %v511_v49 }
  0xbb   :  { %363 = vmatpush.bf16.msrb.mxu2 %v510_v50 }
  0xbf   :  { %364 = vmatpush.bf16.msrb.mxu2 %v509_v51 }
  0xc0   :  { %v156_v15 = vpop.trf.xlu0 }
  0xc1   :  { %430 = vmatmul.msk.bf16.vlgmr.msra.gmra.mxu1 %vm119_vm1, %v156_v15 }
  0xc3   :  { %365 = vmatpush.bf16.msrb.mxu2 %v508_v56 }
  0xc7   :  { %366 = vmatpush.bf16.msrb.mxu2 %v507_v57 }
 0x12d   :  { %v194_v16 = vpop.f32.mrf.mxu2 }
 0x12e   :  { %v198_v21 = vmax.f32 %v194_v16, 0.0 }
 0x130   :  { %v199_v23 = vmin.f32 %v198_v21, 1.0 }
 0x132   :  { %v200_v27 = vmul.f32 0.6, %v199_v23 }
 0x135   :  { %v196_v19 = vpop.f32.mrf.mxu2 }
 0x13e   :  { %v179_v24 = vpop.f32.mrf.mxu1 }
 0x13f   :  { %v183_v25 = vmax.f32 %v179_v24, 0.0 }
 0x141   :  { %v184_v28 = vmin.f32 %v183_v25, 1.0 }
 0x143   :  { %v201_v29 = vmul.f32 0.4, %v184_v28 }
 0x145   :  { %v202_v30 = vadd.f32 %v201_v29, %v200_v27 }
 0x146   :  { %v181_v31 = vpop.f32.mrf.mxu1 }
 0x147   :  { %v203_v32 = vmax.f32 %v202_v30, 0.0 }
 0x149   :  { %v204_v33 = vmin.f32 %v203_v32, 1.0 }
 0x14b   :  { %v205_v34 = vpack.c.bf16 %v204_v33, %v204_v33 }
 0x14d   :  { %v207_v35 = vsel %vm123_vm0, %v205_v34, 0 }
 0x14e   :  { %216 = vmatpush.bf16.msra.mxu3 %v207_v35 }
 0x151   :  { %432 = vmatmul.msk.bf16.vlgmr.msra.gmra.mxu3 %vm119_vm1, %v156_v15 }
 0x1d4   :  { %v218_v39 = vpop.f32.mrf.mxu3 }
 0x1d5   :  { %v222_v40 = vmax.f32 %v218_v39, 0.0 }
 0x1d7   :  { %v223_v41 = vmin.f32 %v222_v40, 1.0 }
 0x1d9   :  { %v224_v42 = vmul.f32 0.4, %v223_v41 }
 0x1db   :  { %v225_v43 = vadd.f32 %v224_v42, %v200_v27 }
 0x1dc   :  { %v220_v44 = vpop.f32.mrf.mxu3 }
 0x1dd   :  { %v226_v45 = vpack.c.bf16 %v225_v43, %v225_v43 }
 0x1df   :  { %283 = vmatmul.bf16.vlgmr.msrb.gmra.mxu0 %v226_v45 }
 0x25c   :  { %v284_v52 = vpop.f32.mrf.mxu0 }
 0x25d   :  { %v288_v53 = vpack.c.bf16 %v284_v52, %v284_v52 }
 0x25f   :  { %v294_v54 = vsel %vm123_vm0, %v288_v53, 0 }
 0x260   :  { %303 = vmatpush.bf16.msrb.mxu1 %v294_v54 }
 0x263   :  { %465 = vmatmul.msk.bf16.vlgmr.msrb.gmra.mxu1 %vm119_vm1, %v711_v0 }
 0x264   :  { %v286_v55 = vpop.f32.mrf.mxu0 }
 0x2e0   :  { %v305_v59 = vpop.f32.mrf.mxu1 }
 0x2e1   :  { %v306_v60 = vadd.f32 %v523_v58, %v305_v59 }
 0x2e3   :  { %v309_v61 = vmax.f32 %v306_v60, 0.0 }
 0x2e5   :  { %v310_v62 = vpack.c.bf16 %v309_v61, %v309_v61 }
 0x2e7   :  { %367 = vmatmul.bf16.vlgmr.msrb.gmra.mxu2 %v310_v62 }
 0x2e8   :  { %v307_v63 = vpop.f32.mrf.mxu1 }
 0x36a   :  { %v368_v1 = vpop.f32.mrf.mxu2 }
 0x36b   :  { %v372_v2 = vpack.c.bf16 %v368_v1, %v368_v1 }
 0x36d   :  { %v378_v3 = vsel %vm123_vm0, %v372_v2, 0 }
 0x36e   :  { %387 = vmatpush.bf16.msrb.mxu3 %v378_v3 }
 0x371   :  { %498 = vmatmul.msk.bf16.vlgmr.msrb.gmra.mxu3 %vm119_vm1, %v711_v0 }
 0x372   :  { %v370_v4 = vpop.f32.mrf.mxu2 }
 0x3f4   :  { %v389_v8 = vpop.f32.mrf.mxu3 }
 0x3f5   :  { %v390_v9 = vadd.f32 %v524_v7, %v389_v8 }
 0x3f7   :  { %v396_v10 = vsel %vm395_vm2, %v390_v9, -inf }
 0x3f8   :  { %397 = vmax.xlane.f32.xlu0 %v396_v10 }
 0x3fc   :  { %v391_v11 = vpop.f32.mrf.mxu3 }
 0x46b   :  { %v398_v12 = vpop.xlane.xlu0 %397 }
 0x46c   :  { %v399_v13 = vsub.f32 %v390_v9, %v398_v12 }
 0x46e   :  { %v400_v14 = vmul.f32 1.442695, %v399_v13 }
 0x470   :  { %525 = vpow2.f32 %v400_v14 }
 0x476   :  { %v526_v15 = vpop.eup %525 }
 0x477   :  { %v402_v0 = vsel %vm395_vm2, %v526_v15, 0.0 }
 0x478   :  { %403 = vadd.xlane.f32.xlu1 %v402_v0 }
 0x4eb   :  { %v404_v16 = vpop.xlane.xlu1 %403 }
 0x4ec   :  { %527 = vlog2.f32 %v404_v16 }
 0x4f2   :  { %v528_v17 = vpop.eup %527 }
 0x4f3   :  { %v406_v18 = vmul.f32 0.6931472, %v528_v17 }
 0x4f5   :  { %v407_v19 = vsub.f32 %v399_v13, %v406_v18 }
 0x4f7   :  { %v408_v20 = vsel %vm395_vm2, %v407_v19, 0.0 }
 0x4f8   :  { %409 = vst [vmem:[#allocation10] sm:$0xff] %v408_v20 }
 0x4f9   :  { %420 = dma.vmem_to_hbm [thread:$0]  %s416_s5, 128, %s418_s21, [#allocation4]  }
 0x4fa   :  { %655 = dma.done.wait [#allocation4], 128  }
 0x4fb   :  { %656 = vsyncadd [#allocation4], 4294967168 }
 0x4fc   :  { %425 = vsyncpa [#allocation3], 1 }
 0x4fd   :  { %426 = vsyncpa [#allocation6], 1 }
 0x4fe   :  { %427 = vsyncpa [#allocation9], 1 }
 0x4ff   :  { %428 = vsyncpa [#allocation4], 1 }

</bundles_post_ra>
